<compile_context>
chip_gen: v5e
topology: v5e:2x2
jax: 0.10.0
libtpu: 0.0.40
codegen_flags: <defaults>
</compile_context>

<pallas_src>
import functools

import jax
import jax.numpy as jnp
from jax.experimental import pallas as pl
from jax.experimental.pallas import tpu as pltpu

F_IN = 16      # number of input features (X_train.shape[1] in the reference)
H1 = 128       # fc1 output
H2 = 64        # fc2 output


def mlp_kernel(x_ref, w1_ref, b1_ref, w2_ref, b2_ref, w3_ref, b3_ref, o_ref):
    # Feature-major: batch is the lane axis of every operand.
    x = x_ref[...]                                                    # (F_IN, TB) bf16

    # fc1: (H1, F_IN) @ (F_IN, TB) -> (H1, TB), f32 accumulation.
    h1 = jnp.dot(w1_ref[...], x, preferred_element_type=jnp.float32)
    h1 = jnp.maximum(h1 + b1_ref[...], 0.0)                           # bias/ReLU in f32

    # fc2: (H2, H1) @ (H1, TB) -> (H2, TB).
    h2 = jnp.dot(w2_ref[...], h1.astype(jnp.bfloat16),
                 preferred_element_type=jnp.float32)
    h2 = jnp.maximum(h2 + b2_ref[...], 0.0)

    # fc3: (1, H2) @ (H2, TB) -> (1, TB); result is already lane-dense.
    out = jnp.dot(w3_ref[...], h2.astype(jnp.bfloat16),
                  preferred_element_type=jnp.float32)
    o_ref[...] = (out + b3_ref[...]).astype(o_ref.dtype)


def _round_up(n, m):
    return ((n + m - 1) // m) * m


def rent_prediction_forward(x, params, block_b=2048):
    """x: [B, F_IN] float32 -> [B, 1] float32."""
    w1t, b1, w2t, b2, w3r, b3 = params
    B, f_in = x.shape
    assert f_in == F_IN

    # Lane-axis batch tile: multiple of 128 (lane-dense, unmasked stores).
    # When B is large enough, cap the tile so there are >= 2 grid steps for
    # v7x megacore sharding; per-step overhead is amortized by tiles up to
    # block_b on v6e/v7x.
    if B > 128:
        tb = min(_round_up(min(block_b, B), 128),
                 _round_up(pl.cdiv(B, 2), 128))
    else:
        tb = 128
    num_tiles = pl.cdiv(B, tb)
    b_pad = num_tiles * tb

    # bf16 for all MXU operands (halves x HBM traffic, ~3x fewer MXU passes);
    # accumulation stays f32 inside the kernel. Biases stay f32.
    xt = x.astype(jnp.bfloat16).T                                     # (F_IN, B)
    if b_pad != B:
        xt = jnp.pad(xt, ((0, 0), (0, b_pad - B)))                    # zero-padded lanes
    w1t_b = w1t.astype(jnp.bfloat16)
    w2t_b = w2t.astype(jnp.bfloat16)
    w3r_b = w3r.astype(jnp.bfloat16)

    weight_bytes = 2 * (H1 * F_IN + H2 * H1 + H2) + 4 * (H1 + H2 + 1)
    cost = pl.CostEstimate(
        flops=2 * b_pad * (F_IN * H1 + H1 * H2 + H2),
        transcendentals=0,
        bytes_accessed=2 * F_IN * b_pad + 4 * b_pad + weight_bytes,
    )

    out = pl.pallas_call(
        mlp_kernel,
        out_shape=jax.ShapeDtypeStruct((1, b_pad), jnp.float32),
        grid_spec=pltpu.PrefetchScalarGridSpec(
            num_scalar_prefetch=0,
            grid=(num_tiles,),
            in_specs=[
                pl.BlockSpec((F_IN, tb), lambda i: (0, i)),   # x: tiled over lanes
                pl.BlockSpec((H1, F_IN), lambda i: (0, 0)),   # weights: VMEM-resident
                pl.BlockSpec((H1, 1), lambda i: (0, 0)),
                pl.BlockSpec((H2, H1), lambda i: (0, 0)),
                pl.BlockSpec((H2, 1), lambda i: (0, 0)),
                pl.BlockSpec((1, H2), lambda i: (0, 0)),      # fc3 weight row
                pl.BlockSpec((1, 1), lambda i: (0, 0)),       # fc3 bias
            ],
            out_specs=pl.BlockSpec((1, tb), lambda i: (0, i)),
        ),
        compiler_params=pltpu.CompilerParams(
            dimension_semantics=("parallel",),   # megacore sharding on v7x
        ),
        cost_estimate=cost,
    )(xt, w1t_b, b1, w2t_b, b2, w3r_b, b3)

    return out[0, :B].reshape(B, 1)


def init_params(key):
    """Deterministic init mirroring nn.Linear default (uniform +-1/sqrt(fan_in)).

    Weights are stored feature-major (PyTorch [out_features, in_features]
    layout), which is exactly what the transposed kernel consumes directly.
    """
    ks = jax.random.split(key, 6)

    def lin(kw, kb, fan_in, fan_out):
        bound = 1.0 / jnp.sqrt(fan_in)
        w = jax.random.uniform(kw, (fan_out, fan_in), jnp.float32, -bound, bound)
        b = jax.random.uniform(kb, (fan_out, 1), jnp.float32, -bound, bound)
        return w, b

    w1t, b1 = lin(ks[0], ks[1], F_IN, H1)     # (128, 16), (128, 1)
    w2t, b2 = lin(ks[2], ks[3], H1, H2)       # (64, 128), (64, 1)
    w3r, b3 = lin(ks[4], ks[5], H2, 1)        # (1, 64),   (1, 1)
    return (w1t, b1, w2t, b2, w3r, b3)


def reference_forward(x, params):
    """Pure-JAX f32 reference matching the PyTorch module exactly."""
    w1t, b1, w2t, b2, w3r, b3 = params
    h = jnp.maximum(x @ w1t.T + b1.T, 0.0)
    h = jnp.maximum(h @ w2t.T + b2.T, 0.0)
    return h @ w3r.T + b3.T


if __name__ == "__main__":
    key = jax.random.PRNGKey(0)
    k_x1, k_x2, k_p = jax.random.split(key, 3)
    params = init_params(k_p)

    # bf16 MXU operands vs. f32 reference => looser tolerance (expected).
    ATOL, RTOL = 1e-1, 5e-2

    # Case 1: small batch -> single 128-lane tile (padded lanes sliced off).
    B1 = 8
    x1 = jax.random.normal(k_x1, (B1, F_IN), dtype=jnp.float32)
    out1 = jax.block_until_ready(rent_prediction_forward(x1, params))
    ref1 = reference_forward(x1, params)
    assert out1.shape == (B1, 1)
    assert jnp.allclose(out1, ref1, atol=ATOL, rtol=RTOL), float(
        jnp.max(jnp.abs(out1 - ref1)))

    # Case 2: batch not divisible by the tile -> multi-step grid (parallel
    # axis) plus the wrapper-side lane padding/slicing path.
    B2 = 300
    x2 = jax.random.normal(k_x2, (B2, F_IN), dtype=jnp.float32)
    out2 = jax.block_until_ready(rent_prediction_forward(x2, params, block_b=128))
    ref2 = reference_forward(x2, params)
    assert out2.shape == (B2, 1)
    assert jnp.allclose(out2, ref2, atol=ATOL, rtol=RTOL), float(
        jnp.max(jnp.abs(out2 - ref2)))

    print("KERNEL_OK")
</pallas_src>

<mosaic_0001>
module attributes {stable_mosaic.version = 11 : i64} {
  func.func @mlp_kernel(%arg0: i32, %arg1: memref<16x128xbf16, #tpu.memory_space<vmem>>, %arg2: memref<128x16xbf16, #tpu.memory_space<vmem>>, %arg3: memref<128x1xf32, #tpu.memory_space<vmem>>, %arg4: memref<64x128xbf16, #tpu.memory_space<vmem>>, %arg5: memref<64x1xf32, #tpu.memory_space<vmem>>, %arg6: memref<1x64xbf16, #tpu.memory_space<vmem>>, %arg7: memref<1x1xf32, #tpu.memory_space<vmem>>, %arg8: memref<1x128xf32, #tpu.memory_space<vmem>>) attributes {dimension_semantics = [#tpu.dimension_semantics<parallel>], iteration_bounds = array<i64: 1>, scalar_prefetch = 0 : i64, scratch_operands = 0 : i64, tpu.core_type = #tpu.core_type<tc>, window_params = [{transform_indices = @transform_0, window_bounds = array<i64: 16, 128>}, {pipeline_mode = #tpu.pipeline_mode<synchronous>, transform_indices = @transform_1, window_bounds = array<i64: 128, 16>}, {pipeline_mode = #tpu.pipeline_mode<synchronous>, transform_indices = @transform_2, window_bounds = array<i64: 128, 1>}, {pipeline_mode = #tpu.pipeline_mode<synchronous>, transform_indices = @transform_3, window_bounds = array<i64: 64, 128>}, {pipeline_mode = #tpu.pipeline_mode<synchronous>, transform_indices = @transform_4, window_bounds = array<i64: 64, 1>}, {pipeline_mode = #tpu.pipeline_mode<synchronous>, transform_indices = @transform_5, window_bounds = array<i64: 1, 64>}, {pipeline_mode = #tpu.pipeline_mode<synchronous>, transform_indices = @transform_6, window_bounds = array<i64: 1, 1>}, {transform_indices = @transform_7, window_bounds = array<i64: 1, 128>}]} {
    %c0 = arith.constant 0 : index
    %c0_0 = arith.constant 0 : index
    %0 = vector.load %arg1[%c0, %c0_0] : memref<16x128xbf16, #tpu.memory_space<vmem>>, vector<16x128xbf16>
    %c0_1 = arith.constant 0 : index
    %c0_2 = arith.constant 0 : index
    %1 = vector.load %arg2[%c0_1, %c0_2] : memref<128x16xbf16, #tpu.memory_space<vmem>>, vector<128x16xbf16>
    %cst = arith.constant dense<0.000000e+00> : vector<128x128xf32>
    %2 = tpu.matmul %1, %0, %cst {dimension_numbers = #tpu.dot_dimension_numbers<[1], [0], [0], [1], [0, 0, 1, 1], [], []>} : vector<128x16xbf16>, vector<16x128xbf16>, vector<128x128xf32> -> vector<128x128xf32>
    %c0_3 = arith.constant 0 : index
    %c0_4 = arith.constant 0 : index
    %3 = vector.load %arg3[%c0_3, %c0_4] : memref<128x1xf32, #tpu.memory_space<vmem>>, vector<128x1xf32>
    %4 = vector.broadcast %3 : vector<128x1xf32> to vector<128x128xf32>
    %5 = arith.addf %2, %4 : vector<128x128xf32>
    %cst_5 = arith.constant 0.000000e+00 : f32
    %6 = vector.broadcast %cst_5 : f32 to vector<128x128xf32>
    %7 = arith.maximumf %5, %6 : vector<128x128xf32>
    %c0_6 = arith.constant 0 : index
    %c0_7 = arith.constant 0 : index
    %8 = vector.load %arg4[%c0_6, %c0_7] : memref<64x128xbf16, #tpu.memory_space<vmem>>, vector<64x128xbf16>
    %9 = arith.truncf %7 : vector<128x128xf32> to vector<128x128xbf16>
    %cst_8 = arith.constant dense<0.000000e+00> : vector<64x128xf32>
    %10 = tpu.matmul %8, %9, %cst_8 {dimension_numbers = #tpu.dot_dimension_numbers<[1], [0], [0], [1], [0, 0, 1, 1], [], []>} : vector<64x128xbf16>, vector<128x128xbf16>, vector<64x128xf32> -> vector<64x128xf32>
    %c0_9 = arith.constant 0 : index
    %c0_10 = arith.constant 0 : index
    %11 = vector.load %arg5[%c0_9, %c0_10] : memref<64x1xf32, #tpu.memory_space<vmem>>, vector<64x1xf32>
    %12 = vector.broadcast %11 : vector<64x1xf32> to vector<64x128xf32>
    %13 = arith.addf %10, %12 : vector<64x128xf32>
    %cst_11 = arith.constant 0.000000e+00 : f32
    %14 = vector.broadcast %cst_11 : f32 to vector<64x128xf32>
    %15 = arith.maximumf %13, %14 : vector<64x128xf32>
    %c0_12 = arith.constant 0 : index
    %c0_13 = arith.constant 0 : index
    %16 = vector.load %arg6[%c0_12, %c0_13] : memref<1x64xbf16, #tpu.memory_space<vmem>>, vector<1x64xbf16>
    %17 = arith.truncf %15 : vector<64x128xf32> to vector<64x128xbf16>
    %cst_14 = arith.constant dense<0.000000e+00> : vector<1x128xf32>
    %18 = tpu.matmul %16, %17, %cst_14 {dimension_numbers = #tpu.dot_dimension_numbers<[1], [0], [0], [1], [0, 0, 1, 1], [], []>} : vector<1x64xbf16>, vector<64x128xbf16>, vector<1x128xf32> -> vector<1x128xf32>
    %c0_15 = arith.constant 0 : index
    %c0_16 = arith.constant 0 : index
    %19 = vector.load %arg7[%c0_15, %c0_16] : memref<1x1xf32, #tpu.memory_space<vmem>>, vector<1x1xf32>
    %20 = vector.broadcast %19 : vector<1x1xf32> to vector<1x128xf32>
    %21 = arith.addf %18, %20 : vector<1x128xf32>
    %c0_17 = arith.constant 0 : index
    %c0_18 = arith.constant 0 : index
    %22 = vector.load %arg8[%c0_17, %c0_18] : memref<1x128xf32, #tpu.memory_space<vmem>>, vector<1x128xf32>
    tpu.vector_store %arg8[%c0_17, %c0_18], %21 {strides = array<i32>} : memref<1x128xf32, #tpu.memory_space<vmem>>, vector<1x128xf32>,
    return
  }
  func.func @transform_0(%arg0: i32) -> (i32, i32) {
    %c0_i32 = arith.constant 0 : i32
    %c0_i32_0 = arith.constant 0 : i32
    return %c0_i32, %arg0 : i32, i32
  }
  func.func @transform_1(%arg0: i32) -> (i32, i32) {
    %c0_i32 = arith.constant 0 : i32
    %c0_i32_0 = arith.constant 0 : i32
    %c0_i32_1 = arith.constant 0 : i32
    return %c0_i32, %c0_i32_0 : i32, i32
  }
  func.func @transform_2(%arg0: i32) -> (i32, i32) {
    %c0_i32 = arith.constant 0 : i32
    %c0_i32_0 = arith.constant 0 : i32
    %c0_i32_1 = arith.constant 0 : i32
    return %c0_i32, %c0_i32_0 : i32, i32
  }
  func.func @transform_3(%arg0: i32) -> (i32, i32) {
    %c0_i32 = arith.constant 0 : i32
    %c0_i32_0 = arith.constant 0 : i32
    %c0_i32_1 = arith.constant 0 : i32
    return %c0_i32, %c0_i32_0 : i32, i32
  }
  func.func @transform_4(%arg0: i32) -> (i32, i32) {
    %c0_i32 = arith.constant 0 : i32
    %c0_i32_0 = arith.constant 0 : i32
    %c0_i32_1 = arith.constant 0 : i32
    return %c0_i32, %c0_i32_0 : i32, i32
  }
  func.func @transform_5(%arg0: i32) -> (i32, i32) {
    %c0_i32 = arith.constant 0 : i32
    %c0_i32_0 = arith.constant 0 : i32
    %c0_i32_1 = arith.constant 0 : i32
    return %c0_i32, %c0_i32_0 : i32, i32
  }
  func.func @transform_6(%arg0: i32) -> (i32, i32) {
    %c0_i32 = arith.constant 0 : i32
    %c0_i32_0 = arith.constant 0 : i32
    %c0_i32_1 = arith.constant 0 : i32
    return %c0_i32, %c0_i32_0 : i32, i32
  }
  func.func @transform_7(%arg0: i32) -> (i32, i32) {
    %c0_i32 = arith.constant 0 : i32
    %c0_i32_0 = arith.constant 0 : i32
    return %c0_i32, %arg0 : i32, i32
  }
}

</mosaic_0001>

<bundles_post_ra>
// kernel: tpu_custom_call.1
= control target key start
LH: loop header
LB: loop body
LE: loop exit
PB: predicated region body
PF: predicated region fallthrough
CT: control target
= control target key end

     0   :  { %s741_s0 = inlined_call_operand.vmem [shape: bf16[16,128], index: 0, kind: input, shape index: {}]   ;;  %s742_s1 = inlined_call_operand.vmem [shape: bf16[128,16], index: 1, kind: input, shape index: {}]   ;;  %s743_s2 = inlined_call_operand.vmem [shape: f32[128,1], index: 2, kind: input, shape index: {}]   ;;  %s744_s3 = inlined_call_operand.vmem [shape: bf16[64,128], index: 3, kind: input, shape index: {}]   ;;  %s745_s4 = inlined_call_operand.vmem [shape: f32[64,1], index: 4, kind: input, shape index: {}]   ;;  %s746_s5 = inlined_call_operand.vmem [shape: bf16[1,64], index: 5, kind: input, shape index: {}]   ;;  %s747_s6 = inlined_call_operand.<no memory space> [shape: f32[1,1], index: 6, kind: input, shape index: {}]   ;;  %s748_s7 = inlined_call_operand.hbm [shape: f32[1,128], index: 7, kind: output, shape index: {}]  }
   0x1   :  { %v12_v0 = vstv %s747_s6 }
   0x2   :  { %13 = vst [vmem:[#allocation2] sm:$0x1] %v12_v0 }
   0x3   :  { %v62_v1 = vld [vmem:[%s743_s2 + $0x70] sm:$0xff]  ;;  %v512_v2 = vld [vmem:[%s741_s0] sm:$0xff]  ;;  %v565_v3 = vmov 0   ;;  %vm190_vm0 = vcmask 130048  }
   0x4   :  { %536 = vset.pattern.permute.xlu0 %v565_v3  ;;  %v513_v4 = vld [vmem:[%s742_s1] sm:$0xff]  ;;  %537 = vset.pattern.permute.xlu1 %v565_v3  ;;  %v58_v7 = vld [vmem:[%s743_s2 + $0x50] sm:$0xff] }
   0x5   :  { %v60_v5 = vld [vmem:[%s743_s2 + $0x60] sm:$0xff]  ;;  %136 = vperm.xlu0 %536, %v62_v1   ;;  %222 = vmatpush.bf16.msra.mxu0 %v512_v2 }
   0x6   :  { %v517_v6 = vld [vmem:[%s742_s1 + $0x20] sm:$0xff]  ;;  %525 = vmatpush.bf16.msra.mxu3 %v512_v2  ;;  %126 = vperm.xlu1 %537, %v60_v5  }
   0x7   :  { %538 = vset.pattern.permute.xlu2 %v565_v3 }
   0x8   :  { %487 = vmatmul.msk.bf16.vlgmr.msra.gmra.mxu0 %vm190_vm0, %v513_v4  ;;  %116 = vperm.xlu2 %538, %v58_v7  }
   0x9   :  { %14 = vsyncpa [#allocation4], 0  ;;  %491 = vmatmul.msk.bf16.vlgmr.msra.gmra.mxu3 %vm190_vm0, %v517_v6  ;;  %v63_v8 = vld [vmem:[%s743_s2 + $0x78] sm:$0xff]  ;;  %v61_v9 = vld [vmem:[%s743_s2 + $0x68] sm:$0xff]  ;;  %vm417_vm1 = vcmask 523264   ;;  %s566_s23 = smov [#allocation3]  }
   0xa   :  { %v59_v10 = vld [vmem:[%s743_s2 + $0x58] sm:$0xff]  ;;  %v56_v11 = vld [vmem:[%s743_s2 + $0x40] sm:$0xff]  ;;  %v57_v12 = vld [vmem:[%s743_s2 + $0x48] sm:$0xff]  ;;  %s440_s24 = sshll.u32 %s566_s23, 4  ;;  %s442_s27 = sshll.u32 %s748_s7, 4  ;;  %s441_s24 = int_to_ptr.vmem [resolvable:$true] %s440_s24  ;;  %s443_s27 = int_to_ptr.hbm [resolvable:$true] %s442_s27 }
   0xb   :  { %v514_v13 = vld [vmem:[%s742_s1 + $0x8] sm:$0xff]  ;;  %v54_v15 = vld [vmem:[%s743_s2 + $0x30] sm:$0xff]  ;;  %v55_v16 = vld [vmem:[%s743_s2 + $0x38] sm:$0xff] }
   0xc   :  { %v518_v14 = vld [vmem:[%s742_s1 + $0x28] sm:$0xff]  ;;  %v52_v17 = vld [vmem:[%s743_s2 + $0x20] sm:$0xff]  ;;  %v50_v19 = vld [vmem:[%s743_s2 + $0x10] sm:$0xff] }
   0xd   :  { %141 = vperm.xlu0 %536, %v63_v8   ;;  %v53_v18 = vld [vmem:[%s743_s2 + $0x28] sm:$0xff]  ;;  %v51_v20 = vld [vmem:[%s743_s2 + $0x18] sm:$0xff]  ;;  %v515_v21 = vld [vmem:[%s742_s1 + $0x10] sm:$0xff] }
   0xe   :  { %131 = vperm.xlu1 %537, %v61_v9   ;;  %v519_v22 = vld [vmem:[%s742_s1 + $0x30] sm:$0xff]  ;;  %v48_v23 = vld [vmem:[%s743_s2] sm:$0xff]  ;;  %v49_v24 = vld [vmem:[%s743_s2 + $0x8] sm:$0xff] }
   0xf   :  { %v302_v25 = vld [vmem:[%s745_s4 + $0x30] sm:$0xff]  ;;  %v303_v26 = vld [vmem:[%s745_s4 + $0x38] sm:$0xff]  ;;  %v300_v27 = vld [vmem:[%s745_s4 + $0x20] sm:$0xff] }
  0x10   :  { %121 = vperm.xlu2 %538, %v59_v10   ;;  %v301_v28 = vld [vmem:[%s745_s4 + $0x28] sm:$0xff]  ;;  %v516_v29 = vld [vmem:[%s742_s1 + $0x18] sm:$0xff]  ;;  %v298_v31 = vld [vmem:[%s745_s4 + $0x10] sm:$0xff] }
  0x11   :  { %v520_v30 = vld [vmem:[%s742_s1 + $0x38] sm:$0xff]  ;;  %v296_v33 = vld [vmem:[%s745_s4] sm:$0xff]  ;;  %v297_v34 = vld [vmem:[%s745_s4 + $0x8] sm:$0xff] }
  0x12   :  { %v299_v32 = vld [vmem:[%s745_s4 + $0x18] sm:$0xff]  ;;  %v410_v35 = vld [vmem:[#allocation2] sm:$0x1] }
  0x15   :  { %106 = vperm.xlu0 %536, %v56_v11  }
  0x16   :  { %111 = vperm.xlu1 %537, %v57_v12  }
  0x18   :  { %488 = vmatmul.msk.bf16.gmra.mxu0 %vm190_vm0, %v514_v13  ;;  %96 = vperm.xlu2 %538, %v54_v15  }
  0x19   :  { %492 = vmatmul.msk.bf16.gmra.mxu3 %vm190_vm0, %v518_v14 }
  0x1d   :  { %101 = vperm.xlu0 %536, %v55_v16  }
  0x1e   :  { %86 = vperm.xlu1 %537, %v52_v17  }
  0x20   :  { %91 = vperm.xlu2 %538, %v53_v18  }
  0x25   :  { %76 = vperm.xlu0 %536, %v50_v19  }
  0x26   :  { %81 = vperm.xlu1 %537, %v51_v20  }
  0x28   :  { %489 = vmatmul.msk.bf16.gmra.mxu0 %vm190_vm0, %v515_v21  ;;  %66 = vperm.xlu2 %538, %v48_v23  }
  0x29   :  { %493 = vmatmul.msk.bf16.gmra.mxu3 %vm190_vm0, %v519_v22 }
  0x2d   :  { %71 = vperm.xlu0 %536, %v49_v24  }
  0x2e   :  { %336 = vperm.xlu1 %537, %v302_v25  }
  0x30   :  { %341 = vperm.xlu2 %538, %v303_v26  }
  0x35   :  { %326 = vperm.xlu0 %536, %v300_v27  }
  0x36   :  { %331 = vperm.xlu1 %537, %v301_v28  }
  0x38   :  { %490 = vmatmul.msk.bf16.gmra.mxu0 %vm190_vm0, %v516_v29  ;;  %316 = vperm.xlu2 %538, %v298_v31  }
  0x39   :  { %494 = vmatmul.msk.bf16.gmra.mxu3 %vm190_vm0, %v520_v30 }
  0x3d   :  { %321 = vperm.xlu0 %536, %v299_v32  }
  0x3e   :  { %306 = vperm.xlu1 %537, %v296_v33  }
  0x40   :  { %311 = vperm.xlu2 %538, %v297_v34  }
  0x45   :  { %413 = vperm.xlu0 %536, %v410_v35  }
  0x62   :  { %v117_v49 = vpop.permute.xlu2 %116 }
  0x6a   :  { %v122_v55 = vpop.permute.xlu2 %121 }
  0x72   :  { %v97_v2 = vpop.permute.xlu2 %96 }
  0x77   :  { %v137_v44 = vpop.permute.xlu0 %136 }
  0x78   :  { %v127_v46 = vpop.permute.xlu1 %126 }
  0x7a   :  { %v92_v21 = vpop.permute.xlu2 %91 }
  0x7f   :  { %v142_v48 = vpop.permute.xlu0 %141 }
  0x80   :  { %v132_v51 = vpop.permute.xlu1 %131 }
  0x82   :  { %v67_v34 = vpop.permute.xlu2 %66 }
  0x85   :  { %v717_v36 = vpop.f32.mrf.mxu0 }
  0x87   :  { %v107_v53 = vpop.permute.xlu0 %106 }
  0x88   :  { %v112_v56 = vpop.permute.xlu1 %111 }
  0x8c   :  { %v244_v37 = vpop.f32.mrf.mxu3 }
  0x8d   :  { %v719_v38 = vpop.f32.mrf.mxu0  ;;  %v245_v11 = vadd.f32 %v244_v37, %v107_v53  ;;  %v342_v53 = vpop.permute.xlu2 %341 }
  0x8f   :  { %v102_v62 = vpop.permute.xlu0 %101  ;;  %v272_v20 = vmax.f32 %v245_v11, 0.0 }
  0x90   :  { %v87_v12 = vpop.permute.xlu1 %86 }
  0x94   :  { %v246_v39 = vpop.f32.mrf.mxu3 }
  0x95   :  { %v229_v40 = vpop.f32.mrf.mxu0  ;;  %v247_v8 = vadd.f32 %v246_v39, %v112_v56 }
  0x97   :  { %v273_v15 = vmax.f32 %v247_v8, 0.0  ;;  %v77_v16 = vpop.permute.xlu0 %76 }
  0x98   :  { %v230_v27 = vadd.f32 %v229_v40, %v77_v16  ;;  %v82_v28 = vpop.permute.xlu1 %81 }
  0x99   :  { %v292_v22 = vpack.c.bf16 %v273_v15, %v272_v20  ;;  %v405_v20 = vld [vmem:[%s746_s5] sm:$0x1] }
  0x9a   :  { %v266_v35 = vmax.f32 %v230_v27, 0.0 }
  0x9c   :  { %v249_v41 = vpop.f32.mrf.mxu3 }
  0x9d   :  { %v231_v43 = vpop.f32.mrf.mxu0  ;;  %v250_v6 = vadd.f32 %v249_v41, %v117_v49 }
  0x9e   :  { %v232_v29 = vadd.f32 %v231_v43, %v82_v28 }
  0x9f   :  { %v274_v14 = vmax.f32 %v250_v6, 0.0  ;;  %v72_v33 = vpop.permute.xlu0 %71 }
  0xa0   :  { %v227_v37 = vadd.f32 %v719_v38, %v72_v33  ;;  %v267_v39 = vmax.f32 %v232_v29, 0.0  ;;  %v524_v38 = vld [vmem:[%s744_s3 + $0x18] sm:$0xff] }
  0xa2   :  { %v289_v40 = vpack.c.bf16 %v267_v39, %v266_v35 }
  0xa4   :  { %v251_v42 = vpop.f32.mrf.mxu3 }
  0xa5   :  { %v234_v47 = vpop.f32.mrf.mxu0  ;;  %v252_v3 = vadd.f32 %v251_v42, %v122_v55  ;;  %v225_v42 = vadd.f32 %v717_v36, %v67_v34  ;;  %v522_v36 = vld [vmem:[%s744_s3 + $0x8] sm:$0xff] }
  0xa6   :  { %v235_v23 = vadd.f32 %v234_v47, %v87_v12  ;;  %v523_v47 = vld [vmem:[%s744_s3 + $0x10] sm:$0xff] }
  0xa7   :  { %v275_v9 = vmax.f32 %v252_v3, 0.0 }
  0xa8   :  { %v268_v30 = vmax.f32 %v235_v23, 0.0 }
  0xa9   :  { %v293_v19 = vpack.c.bf16 %v275_v9, %v274_v14 }
  0xac   :  { %v254_v45 = vpop.f32.mrf.mxu3 }
  0xad   :  { %v236_v52 = vpop.f32.mrf.mxu0  ;;  %v255_v63 = vadd.f32 %v254_v45, %v127_v46  ;;  %v264_v45 = vmax.f32 %v225_v42, 0.0  ;;  %v521_v46 = vld [vmem:[%s744_s3] sm:$0xff] }
  0xae   :  { %v237_v24 = vadd.f32 %v236_v52, %v92_v21 }
  0xaf   :  { %v276_v7 = vmax.f32 %v255_v63, 0.0  ;;  %v317_v63 = vpop.permute.xlu2 %316 }
  0xb0   :  { %v269_v31 = vmax.f32 %v237_v24, 0.0 }
  0xb2   :  { %v290_v41 = vpack.c.bf16 %v269_v31, %v268_v30 }
  0xb4   :  { %v256_v50 = vpop.f32.mrf.mxu3 }
  0xb5   :  { %v239_v58 = vpop.f32.mrf.mxu0  ;;  %v257_v60 = vadd.f32 %v256_v50, %v132_v51  ;;  %v337_v51 = vpop.permute.xlu1 %336 }
  0xb6   :  { %v240_v17 = vadd.f32 %v239_v58, %v97_v2 }
  0xb7   :  { %v277_v4 = vmax.f32 %v257_v60, 0.0  ;;  %v312_v9 = vpop.permute.xlu2 %311 }
  0xb8   :  { %v270_v25 = vmax.f32 %v240_v17, 0.0 }
  0xb9   :  { %v294_v10 = vpack.c.bf16 %v277_v4, %v276_v7 }
  0xbc   :  { %v259_v54 = vpop.f32.mrf.mxu3 }
  0xbd   :  { %v260_v57 = vadd.f32 %v259_v54, %v137_v44  ;;  %v241_v13 = vpop.f32.mrf.mxu0  ;;  %v265_v44 = vmax.f32 %v227_v37, 0.0 }
  0xbe   :  { %v242_v18 = vadd.f32 %v241_v13, %v102_v62 }
  0xbf   :  { %v278_v0 = vmax.f32 %v260_v57, 0.0  ;;  %v288_v43 = vpack.c.bf16 %v265_v44, %v264_v45 }
  0xc0   :  { %v271_v26 = vmax.f32 %v242_v18, 0.0 }
  0xc2   :  { %v291_v32 = vpack.c.bf16 %v271_v26, %v270_v25 }
  0xc4   :  { %v261_v59 = vpop.f32.mrf.mxu3 }
  0xc5   :  { %v262_v61 = vadd.f32 %v261_v59, %v142_v48 }
  0xc7   :  { %v279_v1 = vmax.f32 %v262_v61, 0.0  ;;  %v327_v61 = vpop.permute.xlu0 %326 }
  0xc9   :  { %v295_v5 = vpack.c.bf16 %v279_v1, %v278_v0  ;;  %v332_v0 = vpop.permute.xlu1 %331 }
  0xcb   :  { %368 = vmatpush.bf16.msra.mxu1 %v295_v5  ;;  %526 = vmatpush.bf16.msra.mxu2 %v295_v5 }
  0xcf   :  { %369 = vmatpush.bf16.msra.mxu1 %v294_v10  ;;  %527 = vmatpush.bf16.msra.mxu2 %v294_v10  ;;  %v322_v2 = vpop.permute.xlu0 %321 }
  0xd1   :  { %v307_v13 = vpop.permute.xlu1 %306 }
  0xd3   :  { %370 = vmatpush.bf16.msra.mxu1 %v293_v19  ;;  %528 = vmatpush.bf16.msra.mxu2 %v293_v19 }
  0xd7   :  { %371 = vmatpush.bf16.msra.mxu1 %v292_v22  ;;  %529 = vmatpush.bf16.msra.mxu2 %v292_v22  ;;  %v414_v21 = vpop.permute.xlu0 %413 }
  0xd8   :  { %v416_v22 = vperm.slane %v414_v21, 0 }
  0xdb   :  { %372 = vmatpush.bf16.msra.mxu1 %v291_v32  ;;  %530 = vmatpush.bf16.msra.mxu2 %v291_v32 }
  0xdf   :  { %373 = vmatpush.bf16.msra.mxu1 %v290_v41  ;;  %531 = vmatpush.bf16.msra.mxu2 %v290_v41 }
  0xe3   :  { %374 = vmatpush.bf16.msra.mxu1 %v289_v40  ;;  %532 = vmatpush.bf16.msra.mxu2 %v289_v40 }
  0xe7   :  { %375 = vmatpush.bf16.msra.mxu1 %v288_v43  ;;  %533 = vmatpush.bf16.msra.mxu2 %v288_v43 }
  0xea   :  { %376 = vmatmul.bf16.vlgmr.msra.gmra.mxu1 %v521_v46  ;;  %391 = vmatmul.bf16.vlgmr.msra.gmra.mxu2 %v524_v38 }
  0xfa   :  { %381 = vmatmul.bf16.gmra.mxu1 %v522_v36 }
 0x10a   :  { %386 = vmatmul.bf16.gmra.mxu1 %v523_v47 }
 0x167   :  { %v377_v48 = vpop.f32.mrf.mxu1 }
 0x168   :  { %v378_v14 = vadd.f32 %v377_v48, %v307_v13 }
 0x16a   :  { %v397_v18 = vmax.f32 %v378_v14, 0.0 }
 0x16d   :  { %v392_v49 = vpop.f32.mrf.mxu2 }
 0x16e   :  { %v393_v52 = vadd.f32 %v392_v49, %v337_v51 }
 0x16f   :  { %v379_v50 = vpop.f32.mrf.mxu1 }
 0x170   :  { %v403_v57 = vmax.f32 %v393_v52, 0.0  ;;  %v380_v10 = vadd.f32 %v379_v50, %v312_v9 }
 0x172   :  { %v398_v16 = vmax.f32 %v380_v10, 0.0 }
 0x174   :  { %v406_v19 = vpack.c.bf16 %v398_v16, %v397_v18 }
 0x175   :  { %v394_v54 = vpop.f32.mrf.mxu2 }
 0x176   :  { %v395_v55 = vadd.f32 %v394_v54, %v342_v53 }
 0x177   :  { %v382_v56 = vpop.f32.mrf.mxu1 }
 0x178   :  { %v404_v58 = vmax.f32 %v395_v55, 0.0  ;;  %v383_v6 = vadd.f32 %v382_v56, %v317_v63 }
 0x17a   :  { %v409_v59 = vpack.c.bf16 %v404_v58, %v403_v57  ;;  %v399_v15 = vmax.f32 %v383_v6, 0.0 }
 0x17c   :  { %425 = vmatpush.bf16.msrb.mxu2 %v409_v59 }
 0x17f   :  { %v384_v60 = vpop.f32.mrf.mxu1 }
 0x180   :  { %v385_v4 = vadd.f32 %v384_v60, %v322_v2 }
 0x182   :  { %v400_v11 = vmax.f32 %v385_v4, 0.0 }
 0x184   :  { %v407_v17 = vpack.c.bf16 %v400_v11, %v399_v15 }
 0x187   :  { %v387_v62 = vpop.f32.mrf.mxu1 }
 0x188   :  { %v388_v1 = vadd.f32 %v387_v62, %v327_v61 }
 0x18a   :  { %v401_v7 = vmax.f32 %v388_v1, 0.0 }
 0x18f   :  { %v389_v3 = vpop.f32.mrf.mxu1 }
 0x190   :  { %v390_v5 = vadd.f32 %v389_v3, %v332_v0 }
 0x192   :  { %v402_v8 = vmax.f32 %v390_v5, 0.0 }
 0x194   :  { %v408_v12 = vpack.c.bf16 %v402_v8, %v401_v7 }
 0x196   :  { %426 = vmatpush.bf16.msrb.mxu2 %v408_v12 }
 0x19a   :  { %427 = vmatpush.bf16.msrb.mxu2 %v407_v17 }
 0x19e   :  { %428 = vmatpush.bf16.msrb.mxu2 %v406_v19 }
 0x1a1   :  { %511 = vmatmul.msk.bf16.vlgmr.msrb.gmra.mxu2 %vm417_vm1, %v405_v20 }
 0x224   :  { %v430_v23 = vpop.f32.mrf.mxu2 }
 0x225   :  { %v431_v24 = vadd.f32 %v430_v23, %v416_v22 }
 0x227   :  { %434 = vst [vmem:[#allocation3] sm:$0x1] %v431_v24 }
 0x228   :  { %445 = dma.vmem_to_hbm [thread:$0]  %s441_s24, 16, %s443_s27, [#allocation4]  }
 0x22c   :  { %v432_v25 = vpop.f32.mrf.mxu2 }
 0x22d   :  { %563 = dma.done.wait [#allocation4], 16  }
 0x22e   :  { %564 = vsyncadd [#allocation4], 4294967280 }
 0x22f   :  { %450 = vsyncpa [#allocation4], 1 }

</bundles_post_ra>
